<compile_context>
chip_gen: v7x
topology: tpu7x:2x2x1
jax: 0.10.0
libtpu: 0.0.40
codegen_flags: <defaults>
</compile_context>

<pallas_src>
import functools

import jax
import jax.numpy as jnp
from jax.experimental import pallas as pl
from jax.experimental.pallas import tpu as pltpu


def encoder_kernel(w_ref, w1_ref, b1_ref, wh_ref, bh_ref, out_ref, h_ref):
    """One batch tile: h = relu(w @ W1 + b1); out = h @ [Wm|Wv] + [bm|bv]."""
    # First layer on the MXU with f32 accumulation; bias + ReLU on the VPU in f32.
    h = jnp.dot(w_ref[...], w1_ref[...], preferred_element_type=jnp.float32)
    h_ref[...] = jnp.maximum(h + b1_ref[...].astype(jnp.float32), 0.0)

    # Fused mean / log-var head: a single MXU matmul and a single lane-dense
    # (2*latent wide) store instead of two narrow masked stores.
    out = jnp.dot(h_ref[...].astype(wh_ref.dtype), wh_ref[...],
                  preferred_element_type=jnp.float32)
    out_ref[...] = (out + bh_ref[...].astype(jnp.float32)).astype(out_ref.dtype)


def _pick_block_b(B):
    """Largest convenient batch tile that divides B (keeps blocks aligned)."""
    for cand in (512, 256, 128):
        if B % cand == 0:
            return cand
    return B


@functools.partial(jax.jit, static_argnames=("block_b",))
def encoder_forward(w, w1, b1, wm, bm, wv, bv, *, block_b=None):
    B, in_size = w.shape
    hidden = w1.shape[1]
    latent = wm.shape[1]

    # Fuse the two heads -> one lane-dense matmul + store.
    wh = jnp.concatenate([wm, wv], axis=1)     # [hidden, 2*latent]
    bh = jnp.concatenate([bm, bv], axis=1)     # [1, 2*latent]
    out_n = 2 * latent

    if block_b is None:
        block_b = _pick_block_b(B)
    grid = (B // block_b,)

    itemsize = jnp.dtype(w.dtype).itemsize
    flops = 2 * B * (in_size * hidden + hidden * out_n)
    bytes_accessed = itemsize * (
        w.size + w1.size + b1.size + wh.size + bh.size + B * out_n)
    cost = pl.CostEstimate(flops=flops, transcendentals=0,
                           bytes_accessed=bytes_accessed)

    fused = pl.pallas_call(
        encoder_kernel,
        out_shape=jax.ShapeDtypeStruct((B, out_n), w.dtype),
        grid_spec=pltpu.PrefetchScalarGridSpec(
            num_scalar_prefetch=0,
            grid=grid,
            in_specs=[
                # Activations stream over the batch grid axis (pipelined DMA).
                pl.BlockSpec((block_b, in_size), lambda i: (i, 0)),
                # Weights / biases: constant index maps -> VMEM-resident,
                # not re-DMA'd every grid step.
                pl.BlockSpec((in_size, hidden), lambda i: (0, 0)),
                pl.BlockSpec((1, hidden), lambda i: (0, 0)),
                pl.BlockSpec((hidden, out_n), lambda i: (0, 0)),
                pl.BlockSpec((1, out_n), lambda i: (0, 0)),
            ],
            out_specs=pl.BlockSpec((block_b, out_n), lambda i: (i, 0)),
            # Stage the hidden activations in VMEM scratch (avoids vreg spill
            # once block_b x hidden grows).
            scratch_shapes=[pltpu.VMEM((block_b, hidden), jnp.float32)],
        ),
        compiler_params=pltpu.CompilerParams(
            dimension_semantics=("parallel",),
        ),
        cost_estimate=cost,
    )(w, w1, b1, wh, bh)

    z_mean = fused[:, :latent]
    z_log_var = fused[:, latent:]
    return z_mean, z_log_var


def init_params(key, in_size, hidden_size, latent_size, dtype=jnp.float32):
    """Deterministic init mimicking nn.Linear default (uniform +/- 1/sqrt(fan_in))."""
    ks = jax.random.split(key, 6)

    def uni(k, shape, fan_in):
        bound = 1.0 / jnp.sqrt(fan_in)
        return jax.random.uniform(k, shape, dtype, minval=-bound, maxval=bound)

    w1 = uni(ks[0], (in_size, hidden_size), in_size)
    b1 = uni(ks[1], (1, hidden_size), in_size)
    wm = uni(ks[2], (hidden_size, latent_size), hidden_size)
    bm = uni(ks[3], (1, latent_size), hidden_size)
    wv = uni(ks[4], (hidden_size, latent_size), hidden_size)
    bv = uni(ks[5], (1, latent_size), hidden_size)
    return w1, b1, wm, bm, wv, bv


if __name__ == "__main__":
    B, in_size, hidden_size, latent_size = 8, 32, 32, 16

    key = jax.random.PRNGKey(0)
    k_in, k_params = jax.random.split(key)

    w = jax.random.normal(k_in, (B, in_size), jnp.float32)
    params = init_params(k_params, in_size, hidden_size, latent_size)

    z_mean, z_log_var = encoder_forward(w, *params)
    jax.block_until_ready((z_mean, z_log_var))

    # Reference check in plain JAX.
    w1, b1, wm, bm, wv, bv = params
    h_ref = jnp.maximum(w @ w1 + b1, 0.0)
    zm_ref = h_ref @ wm + bm
    zv_ref = h_ref @ wv + bv
    assert z_mean.shape == (B, latent_size)
    assert z_log_var.shape == (B, latent_size)
    assert jnp.allclose(z_mean, zm_ref, atol=1e-5), "z_mean mismatch"
    assert jnp.allclose(z_log_var, zv_ref, atol=1e-5), "z_log_var mismatch"

    print("KERNEL_OK")
</pallas_src>

<mosaic_0001>
module attributes {stable_mosaic.version = 11 : i64} {
  func.func @encoder_kernel(%arg0: i32, %arg1: memref<8x32xf32, #tpu.memory_space<vmem>>, %arg2: memref<32x32xf32, #tpu.memory_space<vmem>>, %arg3: memref<1x32xf32, #tpu.memory_space<vmem>>, %arg4: memref<32x32xf32, #tpu.memory_space<vmem>>, %arg5: memref<1x32xf32, #tpu.memory_space<vmem>>, %arg6: memref<8x32xf32, #tpu.memory_space<vmem>>, %arg7: memref<8x32xf32, #tpu.memory_space<vmem>>) attributes {dimension_semantics = [#tpu.dimension_semantics<parallel>], iteration_bounds = array<i64: 1>, scalar_prefetch = 0 : i64, scratch_operands = 1 : i64, tpu.core_type = #tpu.core_type<tc>, window_params = [{transform_indices = @transform_0, window_bounds = array<i64: 8, 32>}, {pipeline_mode = #tpu.pipeline_mode<synchronous>, transform_indices = @transform_1, window_bounds = array<i64: 32, 32>}, {pipeline_mode = #tpu.pipeline_mode<synchronous>, transform_indices = @transform_2, window_bounds = array<i64: 1, 32>}, {pipeline_mode = #tpu.pipeline_mode<synchronous>, transform_indices = @transform_3, window_bounds = array<i64: 32, 32>}, {pipeline_mode = #tpu.pipeline_mode<synchronous>, transform_indices = @transform_4, window_bounds = array<i64: 1, 32>}, {transform_indices = @transform_5, window_bounds = array<i64: 8, 32>}]} {
    %c0 = arith.constant 0 : index
    %c0_0 = arith.constant 0 : index
    %0 = vector.load %arg1[%c0, %c0_0] : memref<8x32xf32, #tpu.memory_space<vmem>>, vector<8x32xf32>
    %c0_1 = arith.constant 0 : index
    %c0_2 = arith.constant 0 : index
    %1 = vector.load %arg2[%c0_1, %c0_2] : memref<32x32xf32, #tpu.memory_space<vmem>>, vector<32x32xf32>
    %cst = arith.constant dense<0.000000e+00> : vector<8x32xf32>
    %2 = tpu.matmul %0, %1, %cst {dimension_numbers = #tpu.dot_dimension_numbers<[1], [0], [0], [1], [0, 0, 1, 1], [], []>} : vector<8x32xf32>, vector<32x32xf32>, vector<8x32xf32> -> vector<8x32xf32>
    %c0_3 = arith.constant 0 : index
    %c0_4 = arith.constant 0 : index
    %3 = vector.load %arg3[%c0_3, %c0_4] : memref<1x32xf32, #tpu.memory_space<vmem>>, vector<1x32xf32>
    %4 = vector.broadcast %3 : vector<1x32xf32> to vector<8x32xf32>
    %5 = arith.addf %2, %4 : vector<8x32xf32>
    %cst_5 = arith.constant 0.000000e+00 : f32
    %6 = vector.broadcast %cst_5 : f32 to vector<8x32xf32>
    %7 = arith.maximumf %5, %6 : vector<8x32xf32>
    %c0_6 = arith.constant 0 : index
    %c0_7 = arith.constant 0 : index
    %8 = vector.load %arg7[%c0_6, %c0_7] : memref<8x32xf32, #tpu.memory_space<vmem>>, vector<8x32xf32>
    tpu.vector_store %arg7[%c0_6, %c0_7], %7 {strides = array<i32>} : memref<8x32xf32, #tpu.memory_space<vmem>>, vector<8x32xf32>,
    %c0_8 = arith.constant 0 : index
    %c0_9 = arith.constant 0 : index
    %9 = vector.load %arg7[%c0_8, %c0_9] : memref<8x32xf32, #tpu.memory_space<vmem>>, vector<8x32xf32>
    %c0_10 = arith.constant 0 : index
    %c0_11 = arith.constant 0 : index
    %10 = vector.load %arg4[%c0_10, %c0_11] : memref<32x32xf32, #tpu.memory_space<vmem>>, vector<32x32xf32>
    %cst_12 = arith.constant dense<0.000000e+00> : vector<8x32xf32>
    %11 = tpu.matmul %9, %10, %cst_12 {dimension_numbers = #tpu.dot_dimension_numbers<[1], [0], [0], [1], [0, 0, 1, 1], [], []>} : vector<8x32xf32>, vector<32x32xf32>, vector<8x32xf32> -> vector<8x32xf32>
    %c0_13 = arith.constant 0 : index
    %c0_14 = arith.constant 0 : index
    %12 = vector.load %arg5[%c0_13, %c0_14] : memref<1x32xf32, #tpu.memory_space<vmem>>, vector<1x32xf32>
    %13 = vector.broadcast %12 : vector<1x32xf32> to vector<8x32xf32>
    %14 = arith.addf %11, %13 : vector<8x32xf32>
    %c0_15 = arith.constant 0 : index
    %c0_16 = arith.constant 0 : index
    %15 = vector.load %arg6[%c0_15, %c0_16] : memref<8x32xf32, #tpu.memory_space<vmem>>, vector<8x32xf32>
    tpu.vector_store %arg6[%c0_15, %c0_16], %14 {strides = array<i32>} : memref<8x32xf32, #tpu.memory_space<vmem>>, vector<8x32xf32>,
    return
  }
  func.func @transform_0(%arg0: i32) -> (i32, i32) {
    %c0_i32 = arith.constant 0 : i32
    %c0_i32_0 = arith.constant 0 : i32
    return %arg0, %c0_i32 : i32, i32
  }
  func.func @transform_1(%arg0: i32) -> (i32, i32) {
    %c0_i32 = arith.constant 0 : i32
    %c0_i32_0 = arith.constant 0 : i32
    %c0_i32_1 = arith.constant 0 : i32
    return %c0_i32, %c0_i32_0 : i32, i32
  }
  func.func @transform_2(%arg0: i32) -> (i32, i32) {
    %c0_i32 = arith.constant 0 : i32
    %c0_i32_0 = arith.constant 0 : i32
    %c0_i32_1 = arith.constant 0 : i32
    return %c0_i32, %c0_i32_0 : i32, i32
  }
  func.func @transform_3(%arg0: i32) -> (i32, i32) {
    %c0_i32 = arith.constant 0 : i32
    %c0_i32_0 = arith.constant 0 : i32
    %c0_i32_1 = arith.constant 0 : i32
    return %c0_i32, %c0_i32_0 : i32, i32
  }
  func.func @transform_4(%arg0: i32) -> (i32, i32) {
    %c0_i32 = arith.constant 0 : i32
    %c0_i32_0 = arith.constant 0 : i32
    %c0_i32_1 = arith.constant 0 : i32
    return %c0_i32, %c0_i32_0 : i32, i32
  }
  func.func @transform_5(%arg0: i32) -> (i32, i32) {
    %c0_i32 = arith.constant 0 : i32
    %c0_i32_0 = arith.constant 0 : i32
    return %arg0, %c0_i32 : i32, i32
  }
}

</mosaic_0001>

<bundles_post_ra>
// kernel: encoder_forward.1
= control target key start
LH: loop header
LB: loop body
LE: loop exit
PB: predicated region body
PF: predicated region fallthrough
CT: control target
= control target key end

     0   :  { %v249_v0 = vmov 0.0|0.0   ;;  %vm250_vm0 = vmmov 0   ;;  %v251_v4 = vmov 0.0   ;;  %vm32_vm1 = vcmask 261120   ;;  %s322_s1 = inlined_call_operand.vmem [shape: f32[32,32], index: 1, kind: input, shape index: {}]   ;;  %s323_s0 = inlined_call_operand.vmem [shape: f32[8,32], index: 0, kind: input, shape index: {}]   ;;  %s324_s3 = inlined_call_operand.vmem [shape: f32[32,32], index: 3, kind: input, shape index: {}]   ;;  %s325_s2 = inlined_call_operand.vmem [shape: f32[1,32], index: 2, kind: input, shape index: {}]   ;;  %s326_s4 = inlined_call_operand.vmem [shape: f32[1,32], index: 4, kind: input, shape index: {}]   ;;  %s327_s5 = inlined_call_operand.vmem [shape: f32[8,32], index: 5, kind: output, shape index: {}]  }
   0x1   :  { %234 = vmatprep.subr.bf16.mxu0 %v249_v0  ;;  %v21_v1 = vld [vmem:[%s322_s1] sm:$0xff]  ;;  %v22_v2 = vld [vmem:[%s322_s1 + $0x8] sm:$0xff]  ;;  %v23_v3 = vld [vmem:[%s322_s1 + $0x10] sm:$0xff]  ;;  %220 = vmatprep.mubr.msk.f32.mxu0 %vm250_vm0, %v251_v4 }
   0x2   :  { %v235_v5 = vpack.c.bf16 %v22_v2, %v21_v1  ;;  %v24_v6 = vld [vmem:[%s322_s1 + $0x18] sm:$0xff]  ;;  %240 = vmatprep.subr.bf16.mxu1 %v249_v0  ;;  %231 = vmatprep.mubr.msk.f32.mxu1 %vm250_vm0, %v251_v4  ;;  %v20_v8 = vld [vmem:[%s323_s0] sm:$0xff]  ;;  %v110_v10 = vld [vmem:[%s324_s3 + $0x8] sm:$0xff] }
   0x3   :  { %v238_v7 = vpack.c.bf16 %v24_v6, %v23_v3  ;;  %v109_v9 = vld [vmem:[%s324_s3] sm:$0xff]  ;;  %v111_v12 = vld [vmem:[%s324_s3 + $0x10] sm:$0xff]  ;;  %v112_v13 = vld [vmem:[%s324_s3 + $0x18] sm:$0xff] }
   0x4   :  { %236 = vmatpush3.bf16.msra.mxu0 %v235_v5  ;;  %v241_v11 = vpack.c.bf16 %v110_v10, %v109_v9  ;;  %v244_v14 = vpack.c.bf16 %v112_v13, %v111_v12  ;;  %v198_v15 = vld [vmem:[%s325_s2] ss:$0 sm:$0xff] }
   0x5   :  { %237 = vmatprep.subr.bf16.mxu0 %v249_v0  ;;  %v200_v21 = vld [vmem:[%s326_s4] ss:$0 sm:$0xff] }
   0x6   :  { %242 = vmatpush3.bf16.msra.mxu1 %v241_v11 }
   0x7   :  { %243 = vmatprep.subr.bf16.mxu1 %v249_v0 }
   0x8   :  { %239 = vmatpush3.bf16.msra.mxu0 %v238_v7 }
   0xa   :  { %245 = vmatpush3.bf16.msra.mxu1 %v244_v14 }
   0xb   :  { %221 = vmatmul.mubr.msk.f32.vlgmr.msra.gmra.mrb[0].mxu0 %vm32_vm1, %v20_v8 }
  0xde   :  { %v102_v16 = vpop.f32.mrb[0].mxu0 }
  0xdf   :  { %v103_v17 = vadd.f32 %v198_v15, %v102_v16  ;;  %v222_v18 = vpop.f32.mrb[1].mxu0 }
  0xe1   :  { %v106_v19 = vmax.f32 %v103_v17, 0.0 }
  0xe3   :  { %107 = vst.msk [vmem:[#allocation2] sm:$0xff] %vm32_vm1, %v106_v19 }
  0xea   :  { %v108_v20 = vld [vmem:[#allocation2] sm:$0xff] }
  0xeb   :  { %232 = vmatmul.mubr.msk.f32.vlgmr.msra.gmra.mrb[0].mxu1 %vm32_vm1, %v108_v20 }
 0x1be   :  { %v189_v22 = vpop.f32.mrb[0].mxu1 }
 0x1bf   :  { %v190_v23 = vadd.f32 %v200_v21, %v189_v22  ;;  %v233_v24 = vpop.f32.mrb[1].mxu1 }
 0x1c1   :  { %193 = vst.msk [vmem:[%s327_s5] sm:$0xff] %vm32_vm1, %v190_v23 }

</bundles_post_ra>
